<compile_context>
chip_gen: v5e
topology: v5e:2x2
jax: 0.10.0
libtpu: 0.0.40
codegen_flags: <defaults>
</compile_context>

<pallas_src>
import numpy as np
import jax
import jax.numpy as jnp
from jax import lax
from jax.experimental import pallas as pl
from jax.experimental.pallas import tpu as pltpu

_NEG = -1e30          # finite "minus infinity" for padded sublane rows (0 * _NEG == 0)
_CHUNK = 8            # sublane rows of the reduced axis processed per loop step
_MIN_GRID_STEPS = 4   # >= 2 grid steps per TensorCore on dual-core (v7x) parts


def _round_up(v, mult):
    return ((v + mult - 1) // mult) * mult


def _sparsemax_columns(z, z_ref, *, d, dp, nchunks):
    """Sparsemax over axis 0 of a centered (d, tm) f32 tile.

    z      : (d, tm) f32, already per-column max-subtracted.
    z_ref  : (dp, tm) f32 VMEM scratch, dp = round_up(d, _CHUNK).
    Returns the (d, tm) f32 sparse probabilities.
    """
    tm = z.shape[1]

    # Stage z (plus large-negative padding rows) so the chunked loop can take
    # sublane-aligned dynamic slices of the reduced ("j") axis.
    if dp > d:
        z_ref[0:d, :] = z
        z_ref[d:dp, :] = jnp.full((dp - d, tm), _NEG, jnp.float32)
    else:
        z_ref[...] = z

    def body(c, carry):
        k, s = carry
        off = pl.multiple_of(c * _CHUNK, _CHUNK)
        zc = z_ref[pl.ds(off, _CHUNK), :]                      # (C, tm)
        zc_b = zc[:, None, :]                                  # (C, 1, tm)
        # One f32 mask, reused for both the rank count and the masked sum.
        gef = (zc_b >= z[None, :, :]).astype(jnp.float32)      # (C, d, tm)
        k = k + jnp.sum(gef, axis=0)                           # rank counts
        s = s + jnp.sum(gef * zc_b, axis=0)                    # partial sums
        return k, s

    init = (jnp.zeros((d, tm), jnp.float32),
            jnp.zeros((d, tm), jnp.float32))
    if nchunks <= 8:
        k, s = lax.fori_loop(0, nchunks, body, init, unroll=True)
    else:
        k, s = lax.fori_loop(0, nchunks, body, init)

    supf = ((1.0 + k * z) > s).astype(jnp.float32)             # support mask
    ksum = jnp.sum(supf, axis=0, keepdims=True)                # |support| >= 1
    ssum = jnp.sum(z * supf, axis=0, keepdims=True)
    tau = (ssum - 1.0) / ksum                                  # exact divide (cheap, (1,tm))
    return jnp.maximum(z - tau, 0.0)


def _make_col_kernel(d, dp, nchunks):
    def kernel(x_ref, o_ref, z_ref):
        x = x_ref[...].astype(jnp.float32)                     # (d, tm)
        z = x - jnp.max(x, axis=0, keepdims=True)
        out = _sparsemax_columns(z, z_ref, d=d, dp=dp, nchunks=nchunks)
        o_ref[...] = out.astype(o_ref.dtype)
    return kernel


def _make_row_kernel(d, dp, nchunks):
    def kernel(x_ref, o_ref, z_ref):
        # (tm, d) original-layout tile -> (d, tm) via in-kernel XLU transpose.
        x = jnp.transpose(x_ref[...].astype(jnp.float32))
        z = x - jnp.max(x, axis=0, keepdims=True)
        out = _sparsemax_columns(z, z_ref, d=d, dp=dp, nchunks=nchunks)
        o_ref[...] = jnp.transpose(out).astype(o_ref.dtype)    # lane-dense (tm, d)
    return kernel


def _vmem_limit_bytes():
    phys = None
    try:
        info = pltpu.get_tpu_info()
        phys = int(getattr(info, "vmem_capacity_bytes", 0)) or None
    except Exception:
        phys = None
    if phys is None:
        phys = 64 * 1024 * 1024            # conservative: v7x per-TensorCore VMEM
    # Leave headroom for Mosaic internals; cap so dual-core v7x stays safe.
    return int(min(max(phys * 3 // 4, 16 * 1024 * 1024), 96 * 1024 * 1024))


def _pick_tm(m, d, dp, itemsize, vmem_limit, max_lanes):
    """Lane-tile size from the chunked-loop VMEM footprint (per lane of TM)."""
    per_lane = (4 * d * itemsize           # in + out tiles, double-buffered
                + dp * 4                   # z_ref scratch
                + 4 * d * 4                # z, k, s carries + f32 out temp
                + 2 * _CHUNK * d * 4)      # (C, d, tm) compare + product temps
    per_lane = int(per_lane * 3 // 2) + 256            # layout / spill slack
    budget = max(vmem_limit - (2 << 20), 4 << 20)      # keep a couple MiB free
    tm_cap = max(128, min(max_lanes, (budget // per_lane) // 128 * 128))

    if m >= _MIN_GRID_STEPS * 128:
        # Keep >= _MIN_GRID_STEPS grid steps so each TensorCore still pipelines.
        return min(tm_cap, _round_up(pl.cdiv(m, _MIN_GRID_STEPS), 128))
    if m <= tm_cap:
        return m                                        # single full-extent block
    return tm_cap


def sparsemax(x, dim: int = -1, max_lanes: int = 2048):
    """Sparsemax along `dim`, hot path in a Pallas TPU kernel."""
    ndim = x.ndim
    dim = dim % ndim
    d = int(x.shape[dim])

    dp = _round_up(max(d, 1), _CHUNK)
    nchunks = dp // _CHUNK
    itemsize = jnp.dtype(x.dtype).itemsize
    vmem_limit = _vmem_limit_bytes()

    # Fast path: last-axis sparsemax with lane-aligned D -> read (tm, d) blocks
    # of the original layout (free reshape, no XLA transposes).
    row_path = (dim == ndim - 1) and (d % 128 == 0)

    if row_path:
        lead = x.shape[:-1]
        m = int(np.prod(lead)) if len(lead) else 1
        x2 = x.reshape(m, d)
    else:
        x_t = jnp.moveaxis(x, dim, 0)
        lead = x_t.shape[1:]
        m = int(np.prod(lead)) if len(lead) else 1
        x2 = x_t.reshape(d, m)

    tm = _pick_tm(m, d, dp, itemsize, vmem_limit, max_lanes)
    grid = (pl.cdiv(m, tm),)

    if row_path:
        kernel = _make_row_kernel(d, dp, nchunks)
        in_spec = pl.BlockSpec((tm, d), lambda i: (i, 0))
        out_spec = pl.BlockSpec((tm, d), lambda i: (i, 0))
        out_shape = jax.ShapeDtypeStruct((m, d), x.dtype)
    else:
        kernel = _make_col_kernel(d, dp, nchunks)
        in_spec = pl.BlockSpec((d, tm), lambda i: (0, i))
        out_spec = pl.BlockSpec((d, tm), lambda i: (0, i))
        out_shape = jax.ShapeDtypeStruct((d, m), x.dtype)

    out2 = pl.pallas_call(
        kernel,
        out_shape=out_shape,
        grid_spec=pltpu.PrefetchScalarGridSpec(
            num_scalar_prefetch=0,
            grid=grid,
            in_specs=[in_spec],
            out_specs=out_spec,
            scratch_shapes=[pltpu.VMEM((dp, tm), jnp.float32)],
        ),
        compiler_params=pltpu.CompilerParams(
            dimension_semantics=("parallel",),
            vmem_limit_bytes=vmem_limit),
    )(x2)

    if row_path:
        return out2.reshape(x.shape)
    out = out2.reshape((d,) + tuple(lead))
    return jnp.moveaxis(out, 0, dim)


def _sparsemax_ref(x, dim=-1):
    """Pure-JAX sorted reference (verification only)."""
    x = jnp.moveaxis(x, dim, -1).astype(jnp.float32)
    z = x - jnp.max(x, axis=-1, keepdims=True)
    z_sorted = jnp.sort(z, axis=-1)[..., ::-1]
    d = z.shape[-1]
    rng = jnp.arange(1, d + 1, dtype=jnp.float32)
    cssv = jnp.cumsum(z_sorted, axis=-1)
    cond = 1.0 + rng * z_sorted > cssv
    k = jnp.sum(cond, axis=-1, keepdims=True).astype(jnp.float32)
    s_k = jnp.take_along_axis(cssv, k.astype(jnp.int32) - 1, axis=-1)
    tau = (s_k - 1.0) / k
    out = jnp.maximum(z - tau, 0.0)
    return jnp.moveaxis(out, -1, dim)


class Sparsemax:
    """Mirror of the PyTorch nn.Module (no parameters)."""

    def __init__(self, dim: int = -1):
        self.dim = dim

    def __call__(self, x):
        return sparsemax(x, dim=self.dim)


if __name__ == "__main__":
    key = jax.random.PRNGKey(0)

    # Main case: NCHW-like logits, sparsemax over the last axis.
    x = jax.random.normal(key, (2, 4, 16, 16), dtype=jnp.float32)
    module = Sparsemax(dim=-1)
    out = jax.block_until_ready(module(x))
    ref = _sparsemax_ref(x, dim=-1)
    np.testing.assert_allclose(np.asarray(out), np.asarray(ref), rtol=1e-5, atol=1e-5)
    np.testing.assert_allclose(np.asarray(out).sum(-1), 1.0, rtol=1e-5, atol=1e-5)
    assert (np.asarray(out) >= 0.0).all()

    # Non-default dim (channel axis) through the column path.
    out_c = jax.block_until_ready(sparsemax(x, dim=1))
    ref_c = _sparsemax_ref(x, dim=1)
    np.testing.assert_allclose(np.asarray(out_c), np.asarray(ref_c), rtol=1e-5, atol=1e-5)

    # Lane-aligned last axis: exercises the transpose-free row path.
    key, k1 = jax.random.split(key)
    xr = jax.random.normal(k1, (4, 8, 128), dtype=jnp.float32)
    out_r = jax.block_until_ready(sparsemax(xr, dim=-1))
    ref_r = _sparsemax_ref(xr, dim=-1)
    np.testing.assert_allclose(np.asarray(out_r), np.asarray(ref_r), rtol=1e-5, atol=1e-5)
    np.testing.assert_allclose(np.asarray(out_r).sum(-1), 1.0, rtol=1e-5, atol=1e-5)

    # Batch not a multiple of the lane tile: exercises the partial last block.
    key, k2 = jax.random.split(key)
    xp = jax.random.normal(k2, (5, 103, 16), dtype=jnp.float32)
    out_p = jax.block_until_ready(sparsemax(xp, dim=-1))
    ref_p = _sparsemax_ref(xp, dim=-1)
    np.testing.assert_allclose(np.asarray(out_p), np.asarray(ref_p), rtol=1e-5, atol=1e-5)
    np.testing.assert_allclose(np.asarray(out_p).sum(-1), 1.0, rtol=1e-5, atol=1e-5)

    print("KERNEL_OK")
</pallas_src>

<mosaic_0001>
module attributes {stable_mosaic.version = 11 : i64} {
  func.func @kernel(%arg0: i32, %arg1: memref<16x128xf32, #tpu.memory_space<vmem>>, %arg2: memref<16x128xf32, #tpu.memory_space<vmem>>, %arg3: memref<16x128xf32, #tpu.memory_space<vmem>>) attributes {dimension_semantics = [#tpu.dimension_semantics<parallel>], iteration_bounds = array<i64: 1>, scalar_prefetch = 0 : i64, scratch_operands = 1 : i64, tpu.core_type = #tpu.core_type<tc>, window_params = [{transform_indices = @transform_0, window_bounds = array<i64: 16, 128>}, {transform_indices = @transform_1, window_bounds = array<i64: 16, 128>}]} {
    %c0 = arith.constant 0 : index
    %c0_0 = arith.constant 0 : index
    %0 = vector.load %arg1[%c0, %c0_0] : memref<16x128xf32, #tpu.memory_space<vmem>>, vector<16x128xf32>
    %cst = arith.constant dense<0xFF800000> : vector<128xf32>
    %1 = vector.multi_reduction <maximumf>, %0, %cst [0] : vector<16x128xf32> to vector<128xf32>
    %2 = vector.shape_cast %1 : vector<128xf32> to vector<1x128xf32>
    %3 = vector.broadcast %2 : vector<1x128xf32> to vector<16x128xf32>
    %4 = arith.subf %0, %3 : vector<16x128xf32>
    %c0_1 = arith.constant 0 : index
    %c0_2 = arith.constant 0 : index
    %5 = vector.load %arg3[%c0_1, %c0_2] : memref<16x128xf32, #tpu.memory_space<vmem>>, vector<16x128xf32>
    tpu.vector_store %arg3[%c0_1, %c0_2], %4 {strides = array<i32>} : memref<16x128xf32, #tpu.memory_space<vmem>>, vector<16x128xf32>,
    %cst_3 = arith.constant 0.000000e+00 : f32
    %6 = vector.broadcast %cst_3 : f32 to vector<16x128xf32>
    %cst_4 = arith.constant 0.000000e+00 : f32
    %7 = vector.broadcast %cst_4 : f32 to vector<16x128xf32>
    %c0_i32 = arith.constant 0 : i32
    %c8_i32 = arith.constant 8 : i32
    %8 = arith.muli %c0_i32, %c8_i32 : i32
    %9 = tpu.assume_multiple %8, 8 : i32
    %10 = arith.index_cast %9 : i32 to index
    %c0_5 = arith.constant 0 : index
    %11 = vector.load %arg3[%10, %c0_5] : memref<16x128xf32, #tpu.memory_space<vmem>>, vector<8x128xf32>
    %12 = vector.shape_cast %11 : vector<8x128xf32> to vector<8x1x128xf32>
    %13 = vector.shape_cast %4 : vector<16x128xf32> to vector<1x16x128xf32>
    %14 = vector.broadcast %12 : vector<8x1x128xf32> to vector<8x16x128xf32>
    %15 = vector.broadcast %13 : vector<1x16x128xf32> to vector<8x16x128xf32>
    %16 = arith.cmpf oge, %14, %15 : vector<8x16x128xf32>
    %17 = arith.extui %16 : vector<8x16x128xi1> to vector<8x16x128xi32>
    %18 = arith.sitofp %17 : vector<8x16x128xi32> to vector<8x16x128xf32>
    %cst_6 = arith.constant dense<0.000000e+00> : vector<16x128xf32>
    %19 = vector.multi_reduction <add>, %18, %cst_6 [0] : vector<8x16x128xf32> to vector<16x128xf32>
    %20 = arith.addf %6, %19 : vector<16x128xf32>
    %21 = vector.broadcast %12 : vector<8x1x128xf32> to vector<8x16x128xf32>
    %22 = arith.mulf %18, %21 : vector<8x16x128xf32>
    %cst_7 = arith.constant dense<0.000000e+00> : vector<16x128xf32>
    %23 = vector.multi_reduction <add>, %22, %cst_7 [0] : vector<8x16x128xf32> to vector<16x128xf32>
    %24 = arith.addf %7, %23 : vector<16x128xf32>
    %c1_i32 = arith.constant 1 : i32
    %c8_i32_8 = arith.constant 8 : i32
    %25 = arith.muli %c1_i32, %c8_i32_8 : i32
    %26 = tpu.assume_multiple %25, 8 : i32
    %27 = arith.index_cast %26 : i32 to index
    %c0_9 = arith.constant 0 : index
    %28 = vector.load %arg3[%27, %c0_9] : memref<16x128xf32, #tpu.memory_space<vmem>>, vector<8x128xf32>
    %29 = vector.shape_cast %28 : vector<8x128xf32> to vector<8x1x128xf32>
    %30 = vector.shape_cast %4 : vector<16x128xf32> to vector<1x16x128xf32>
    %31 = vector.broadcast %29 : vector<8x1x128xf32> to vector<8x16x128xf32>
    %32 = vector.broadcast %30 : vector<1x16x128xf32> to vector<8x16x128xf32>
    %33 = arith.cmpf oge, %31, %32 : vector<8x16x128xf32>
    %34 = arith.extui %33 : vector<8x16x128xi1> to vector<8x16x128xi32>
    %35 = arith.sitofp %34 : vector<8x16x128xi32> to vector<8x16x128xf32>
    %cst_10 = arith.constant dense<0.000000e+00> : vector<16x128xf32>
    %36 = vector.multi_reduction <add>, %35, %cst_10 [0] : vector<8x16x128xf32> to vector<16x128xf32>
    %37 = arith.addf %20, %36 : vector<16x128xf32>
    %38 = vector.broadcast %29 : vector<8x1x128xf32> to vector<8x16x128xf32>
    %39 = arith.mulf %35, %38 : vector<8x16x128xf32>
    %cst_11 = arith.constant dense<0.000000e+00> : vector<16x128xf32>
    %40 = vector.multi_reduction <add>, %39, %cst_11 [0] : vector<8x16x128xf32> to vector<16x128xf32>
    %41 = arith.addf %24, %40 : vector<16x128xf32>
    %c2_i32 = arith.constant 2 : i32
    %42 = arith.mulf %37, %4 : vector<16x128xf32>
    %cst_12 = arith.constant 1.000000e+00 : f32
    %43 = vector.broadcast %cst_12 : f32 to vector<16x128xf32>
    %44 = arith.addf %43, %42 : vector<16x128xf32>
    %45 = arith.cmpf ogt, %44, %41 : vector<16x128xf32>
    %46 = arith.extui %45 : vector<16x128xi1> to vector<16x128xi32>
    %47 = arith.sitofp %46 : vector<16x128xi32> to vector<16x128xf32>
    %cst_13 = arith.constant dense<0.000000e+00> : vector<128xf32>
    %48 = vector.multi_reduction <add>, %47, %cst_13 [0] : vector<16x128xf32> to vector<128xf32>
    %49 = vector.shape_cast %48 : vector<128xf32> to vector<1x128xf32>
    %50 = arith.mulf %4, %47 : vector<16x128xf32>
    %cst_14 = arith.constant dense<0.000000e+00> : vector<128xf32>
    %51 = vector.multi_reduction <add>, %50, %cst_14 [0] : vector<16x128xf32> to vector<128xf32>
    %52 = vector.shape_cast %51 : vector<128xf32> to vector<1x128xf32>
    %cst_15 = arith.constant 1.000000e+00 : f32
    %53 = vector.broadcast %cst_15 : f32 to vector<1x128xf32>
    %54 = arith.subf %52, %53 : vector<1x128xf32>
    %55 = arith.divf %54, %49 : vector<1x128xf32>
    %56 = vector.broadcast %55 : vector<1x128xf32> to vector<16x128xf32>
    %57 = arith.subf %4, %56 : vector<16x128xf32>
    %cst_16 = arith.constant 0.000000e+00 : f32
    %58 = vector.broadcast %cst_16 : f32 to vector<16x128xf32>
    %59 = arith.maximumf %57, %58 : vector<16x128xf32>
    %c0_17 = arith.constant 0 : index
    %c0_18 = arith.constant 0 : index
    %60 = vector.load %arg2[%c0_17, %c0_18] : memref<16x128xf32, #tpu.memory_space<vmem>>, vector<16x128xf32>
    tpu.vector_store %arg2[%c0_17, %c0_18], %59 {strides = array<i32>} : memref<16x128xf32, #tpu.memory_space<vmem>>, vector<16x128xf32>,
    return
  }
  func.func @transform_0(%arg0: i32) -> (i32, i32) {
    %c0_i32 = arith.constant 0 : i32
    %c0_i32_0 = arith.constant 0 : i32
    return %c0_i32, %arg0 : i32, i32
  }
  func.func @transform_1(%arg0: i32) -> (i32, i32) {
    %c0_i32 = arith.constant 0 : i32
    %c0_i32_0 = arith.constant 0 : i32
    return %c0_i32, %arg0 : i32, i32
  }
}

</mosaic_0001>

<bundles_post_ra>
// kernel: tpu_custom_call.1
= control target key start
LH: loop header
LB: loop body
LE: loop exit
PB: predicated region body
PF: predicated region fallthrough
CT: control target
= control target key end

     0   :  { %6 = vsyncpa [#allocation4], 0  ;;  %s632_s0 = inlined_call_operand.hbm [shape: f32[16,128], index: 0, kind: input, shape index: {}]   ;;  %s633_s1 = inlined_call_operand.hbm [shape: f32[16,128], index: 1, kind: output, shape index: {}]  }
   0x1   :  { %7 = vsyncpa [#allocation5], 0  ;;  %s12_s8 = sshll.u32 %s632_s0, 4  ;;  %s442_s9 = smov [#allocation3]   ;;  %s13_s8 = int_to_ptr.hbm [resolvable:$true] %s12_s8 }
   0x2   :  { %s14_s10 = sshll.u32 %s442_s9, 4  ;;  %s443_s11 = smov 128   ;;  %s15_s10 = int_to_ptr.vmem [resolvable:$true] %s14_s10 }
   0x3   :  { %s444_s12 = smov 8  }
   0x4   :  { %20 = dma.hbm_to_vmem [thread:$0]  %s13_s8, 256, %s15_s10, [#allocation4], %s443_s11, %s443_s11, %s444_s12  }
   0x5   :  { %438 = dma.done.wait [#allocation4], 256  }
   0x6   :  { %439 = vsyncadd [#allocation4], 4294967040  ;;  %v25_v0 = vld [vmem:[#allocation3] sm:$0xff]  ;;  %v26_v1 = vld [vmem:[#allocation3 + $0x8] sm:$0xff]  ;;  %v445_v24 = vmov 0.0   ;;  %s446_s0 = smov [#allocation6]  }
   0x7   :  { %v27_v2 = vmax.f32 %v25_v0, %v26_v1  ;;  %s333_s13 = sshll.u32 %s446_s0, 4  ;;  %s335_s16 = sshll.u32 %s633_s1, 4  ;;  %s334_s13 = int_to_ptr.vmem [resolvable:$true] %s333_s13  ;;  %s336_s16 = int_to_ptr.hbm [resolvable:$true] %s335_s16 }
   0x9   :  { %v28_v3 = vrot.slane %v27_v2, 4 }
   0xb   :  { %v29_v4 = vmax.f32 %v27_v2, %v28_v3 }
   0xd   :  { %v30_v5 = vrot.slane %v29_v4, 2 }
   0xf   :  { %v31_v6 = vmax.f32 %v29_v4, %v30_v5 }
  0x11   :  { %v32_v7 = vrot.slane %v31_v6, 1 }
  0x13   :  { %v33_v8 = vmax.f32 %v31_v6, %v32_v7 }
  0x15   :  { %v463_v9 = vsub.f32 %v25_v0, %v33_v8  ;;  %v471_v18 = vsub.f32 %v26_v1, %v33_v8 }
  0x17   :  { %v40_v10 = vrot.slane %v463_v9, 1  ;;  %v41_v11 = vrot.slane %v463_v9, 2  ;;  %v42_v12 = vrot.slane %v463_v9, 3  ;;  %v47_v13 = vperm.slane %v463_v9, 0 }
  0x18   :  { %v43_v14 = vrot.slane %v463_v9, 4  ;;  %v44_v16 = vrot.slane %v463_v9, 5  ;;  %v45_v19 = vrot.slane %v463_v9, 6  ;;  %v46_v21 = vrot.slane %v463_v9, 7 }
  0x19   :  { %v48_v15 = vperm.slane %v40_v10, 0  ;;  %v49_v17 = vperm.slane %v41_v11, 0  ;;  %v50_v20 = vperm.slane %v42_v12, 0  ;;  %vm63_vm0 = vcmp.ge.f32.partialorder %v47_v13, %v463_v9 }
  0x1a   :  { %v51_v22 = vperm.slane %v43_v14, 0  ;;  %vm64_vm2 = vcmp.ge.f32.partialorder %v47_v13, %v471_v18  ;;  %v52_v23 = vperm.slane %v44_v16, 0  ;;  %v348_v25 = vsel %vm63_vm0, 1.0, %v445_v24 }
  0x1b   :  { %vm65_vm1 = vcmp.ge.f32.partialorder %v48_v15, %v463_v9  ;;  %vm66_vm3 = vcmp.ge.f32.partialorder %v48_v15, %v471_v18  ;;  %vm67_vm4 = vcmp.ge.f32.partialorder %v49_v17, %v463_v9  ;;  %vm68_vm5 = vcmp.ge.f32.partialorder %v49_v17, %v471_v18 }
  0x1c   :  { %v350_v26 = vsel %vm65_vm1, 1.0, %v445_v24  ;;  %vm69_vm6 = vcmp.ge.f32.partialorder %v50_v20, %v463_v9  ;;  %vm70_vm7 = vcmp.ge.f32.partialorder %v50_v20, %v471_v18  ;;  %v349_v27 = vsel %vm64_vm2, 1.0, %v445_v24 }
  0x1d   :  { %v351_v28 = vsel %vm66_vm3, 1.0, %v445_v24  ;;  %v53_v29 = vperm.slane %v45_v19, 0  ;;  %v487_v30 = vperm.slane %v46_v21, 0  ;;  %vm71_vm8 = vcmp.ge.f32.partialorder %v51_v22, %v463_v9 }
  0x1e   :  { %v352_v31 = vsel %vm67_vm4, 1.0, %v445_v24  ;;  %vm72_vm9 = vcmp.ge.f32.partialorder %v51_v22, %v471_v18  ;;  %vm73_vm10 = vcmp.ge.f32.partialorder %v52_v23, %v463_v9  ;;  %v353_v32 = vsel %vm68_vm5, 1.0, %v445_v24 }
  0x1f   :  { %v111_v33 = vadd.f32 %v350_v26, %v348_v25  ;;  %v354_v34 = vsel %vm69_vm6, 1.0, %v445_v24  ;;  %v355_v35 = vsel %vm70_vm7, 1.0, %v445_v24  ;;  %v118_v36 = vadd.f32 %v351_v28, %v349_v27 }
  0x20   :  { %v127_v37 = vmul.f32 %v348_v25, %v47_v13  ;;  %v128_v39 = vmul.f32 %v349_v27, %v47_v13  ;;  %v129_v40 = vmul.f32 %v350_v26, %v48_v15  ;;  %v130_v41 = vmul.f32 %v351_v28, %v48_v15 }
  0x21   :  { %v112_v38 = vadd.f32 %v352_v31, %v111_v33  ;;  %vm74_vm11 = vcmp.ge.f32.partialorder %v52_v23, %v471_v18  ;;  %vm75_vm12 = vcmp.ge.f32.partialorder %v53_v29, %v463_v9  ;;  %v356_v42 = vsel %vm71_vm8, 1.0, %v445_v24 }
  0x22   :  { %v119_v43 = vadd.f32 %v353_v32, %v118_v36  ;;  %v357_v44 = vsel %vm72_vm9, 1.0, %v445_v24  ;;  %v131_v46 = vmul.f32 %v352_v31, %v49_v17  ;;  %v132_v47 = vmul.f32 %v353_v32, %v49_v17 }
  0x23   :  { %v113_v45 = vadd.f32 %v354_v34, %v112_v38  ;;  %vm76_vm13 = vcmp.ge.f32.partialorder %v53_v29, %v471_v18  ;;  %vm77_vm14 = vcmp.ge.f32.partialorder %v487_v30, %v463_v9  ;;  %v358_v48 = vsel %vm73_vm10, 1.0, %v445_v24 }
  0x24   :  { %v120_v49 = vadd.f32 %v355_v35, %v119_v43  ;;  %vm78_vm15 = vcmp.ge.f32.partialorder %v487_v30, %v471_v18  ;;  %v143_v51 = vadd.f32 %v129_v40, %v127_v37  ;;  %v150_v52 = vadd.f32 %v130_v41, %v128_v39 }
  0x25   :  { %v114_v50 = vadd.f32 %v356_v42, %v113_v45  ;;  %v359_v53 = vsel %vm74_vm11, 1.0, %v445_v24  ;;  %v133_v55 = vmul.f32 %v354_v34, %v50_v20  ;;  %v134_v56 = vmul.f32 %v355_v35, %v50_v20 }
  0x26   :  { %v121_v54 = vadd.f32 %v357_v44, %v120_v49  ;;  %v144_v58 = vadd.f32 %v143_v51, %v131_v46  ;;  %v151_v59 = vadd.f32 %v150_v52, %v132_v47  ;;  %v360_v60 = vsel %vm75_vm12, 1.0, %v445_v24 }
  0x27   :  { %v115_v57 = vadd.f32 %v358_v48, %v114_v50  ;;  %v361_v61 = vsel %vm76_vm13, 1.0, %v445_v24  ;;  %v362_v62 = vsel %vm77_vm14, 1.0, %v445_v24  ;;  %v162_v63 = vrot.slane %v471_v18, 1 }
  0x28   :  { %v363_v0 = vsel %vm78_vm15, 1.0, %v445_v24  ;;  %v122_v1 = vadd.f32 %v359_v53, %v121_v54  ;;  %v135_v2 = vmul.f32 %v356_v42, %v51_v22  ;;  %v136_v3 = vmul.f32 %v357_v44, %v51_v22 }
  0x29   :  { %v137_v4 = vmul.f32 %v358_v48, %v52_v23  ;;  %v145_v5 = vadd.f32 %v144_v58, %v133_v55  ;;  %v152_v6 = vadd.f32 %v151_v59, %v134_v56  ;;  %v163_v7 = vrot.slane %v471_v18, 2 }
  0x2a   :  { %v116_v8 = vadd.f32 %v360_v60, %v115_v57  ;;  %v138_v10 = vmul.f32 %v359_v53, %v52_v23  ;;  %v164_v11 = vrot.slane %v471_v18, 3  ;;  %v165_v12 = vrot.slane %v471_v18, 4 }
  0x2b   :  { %v530_v13 = vmul.f32 %v360_v60, %v53_v29  ;;  %v532_v14 = vmul.f32 %v361_v61, %v53_v29  ;;  %v169_v15 = vperm.slane %v471_v18, 0  ;;  %v170_v16 = vperm.slane %v162_v63, 0 }
  0x2c   :  { %v123_v17 = vadd.f32 %v361_v61, %v122_v1  ;;  %v166_v19 = vrot.slane %v471_v18, 5  ;;  %v167_v20 = vrot.slane %v471_v18, 6  ;;  %v168_v21 = vrot.slane %v471_v18, 7 }
  0x2d   :  { %v539_v22 = vmul.f32 %v362_v62, %v487_v30  ;;  %v146_v23 = vadd.f32 %v145_v5, %v135_v2  ;;  %v153_v25 = vadd.f32 %v152_v6, %v136_v3  ;;  %v171_v26 = vperm.slane %v163_v7, 0 }
  0x2e   :  { %v541_v27 = vadd.f32 %v362_v62, %v116_v8  ;;  %v544_v28 = vmul.f32 %v363_v0, %v487_v30  ;;  %v172_v29 = vperm.slane %v164_v11, 0  ;;  %v173_v31 = vperm.slane %v165_v12, 0 }
  0x2f   :  { %vm185_vm0 = vcmp.ge.f32.partialorder %v169_v15, %v463_v9  ;;  %vm186_vm1 = vcmp.ge.f32.partialorder %v169_v15, %v471_v18  ;;  %vm187_vm2 = vcmp.ge.f32.partialorder %v170_v16, %v463_v9  ;;  %vm188_vm3 = vcmp.ge.f32.partialorder %v170_v16, %v471_v18 }
  0x30   :  { %v550_v32 = vadd.f32 %v363_v0, %v123_v17  ;;  %v174_v33 = vperm.slane %v166_v19, 0  ;;  %v552_v34 = vperm.slane %v167_v20, 0  ;;  %v554_v35 = vperm.slane %v168_v21, 0 }
  0x31   :  { %v147_v36 = vadd.f32 %v146_v23, %v137_v4  ;;  %v154_v30 = vadd.f32 %v153_v25, %v138_v10  ;;  %vm189_vm4 = vcmp.ge.f32.partialorder %v171_v26, %v463_v9  ;;  %vm190_vm5 = vcmp.ge.f32.partialorder %v171_v26, %v471_v18 }
  0x32   :  { %v364_v37 = vsel %vm185_vm0, 1.0, %v445_v24  ;;  %v365_v38 = vsel %vm186_vm1, 1.0, %v445_v24  ;;  %v366_v39 = vsel %vm187_vm2, 1.0, %v445_v24  ;;  %v367_v40 = vsel %vm188_vm3, 1.0, %v445_v24 }
  0x33   :  { %vm191_vm6 = vcmp.ge.f32.partialorder %v172_v29, %v463_v9  ;;  %vm192_vm7 = vcmp.ge.f32.partialorder %v172_v29, %v471_v18  ;;  %vm193_vm8 = vcmp.ge.f32.partialorder %v173_v31, %v463_v9  ;;  %vm194_vm9 = vcmp.ge.f32.partialorder %v173_v31, %v471_v18 }
  0x34   :  { %vm195_vm10 = vcmp.ge.f32.partialorder %v174_v33, %v463_v9  ;;  %vm196_vm11 = vcmp.ge.f32.partialorder %v174_v33, %v471_v18  ;;  %v368_v41 = vsel %vm189_vm4, 1.0, %v445_v24  ;;  %v369_v42 = vsel %vm190_vm5, 1.0, %v445_v24 }
  0x35   :  { %vm197_vm12 = vcmp.ge.f32.partialorder %v552_v34, %v463_v9  ;;  %vm198_vm13 = vcmp.ge.f32.partialorder %v552_v34, %v471_v18  ;;  %v233_v43 = vadd.f32 %v366_v39, %v364_v37  ;;  %v240_v44 = vadd.f32 %v367_v40, %v365_v38 }
  0x36   :  { %v370_v45 = vsel %vm191_vm6, 1.0, %v445_v24  ;;  %v371_v46 = vsel %vm192_vm7, 1.0, %v445_v24  ;;  %v249_v47 = vmul.f32 %v364_v37, %v169_v15  ;;  %v250_v48 = vmul.f32 %v365_v38, %v169_v15 }
  0x37   :  { %v234_v49 = vadd.f32 %v368_v41, %v233_v43  ;;  %v241_v50 = vadd.f32 %v369_v42, %v240_v44  ;;  %v251_v51 = vmul.f32 %v366_v39, %v170_v16  ;;  %v252_v52 = vmul.f32 %v367_v40, %v170_v16 }
  0x38   :  { %vm199_vm14 = vcmp.ge.f32.partialorder %v554_v35, %v463_v9  ;;  %vm200_vm15 = vcmp.ge.f32.partialorder %v554_v35, %v471_v18  ;;  %v372_v53 = vsel %vm193_vm8, 1.0, %v445_v24  ;;  %v373_v54 = vsel %vm194_vm9, 1.0, %v445_v24 }
  0x39   :  { %v235_v55 = vadd.f32 %v370_v45, %v234_v49  ;;  %v242_v56 = vadd.f32 %v371_v46, %v241_v50  ;;  %v253_v57 = vmul.f32 %v368_v41, %v171_v26  ;;  %v254_v58 = vmul.f32 %v369_v42, %v171_v26 }
  0x3a   :  { %v374_v59 = vsel %vm195_vm10, 1.0, %v445_v24  ;;  %v375_v60 = vsel %vm196_vm11, 1.0, %v445_v24  ;;  %v255_v61 = vmul.f32 %v370_v45, %v172_v29  ;;  %v256_v62 = vmul.f32 %v371_v46, %v172_v29 }
  0x3b   :  { %v236_v63 = vadd.f32 %v372_v53, %v235_v55  ;;  %v243_v0 = vadd.f32 %v373_v54, %v242_v56  ;;  %v265_v1 = vadd.f32 %v251_v51, %v249_v47  ;;  %v272_v2 = vadd.f32 %v252_v52, %v250_v48 }
  0x3c   :  { %v376_v3 = vsel %vm197_vm12, 1.0, %v445_v24  ;;  %v377_v4 = vsel %vm198_vm13, 1.0, %v445_v24  ;;  %v257_v5 = vmul.f32 %v372_v53, %v173_v31  ;;  %v258_v6 = vmul.f32 %v373_v54, %v173_v31 }
  0x3d   :  { %v237_v7 = vadd.f32 %v374_v59, %v236_v63  ;;  %v244_v8 = vadd.f32 %v375_v60, %v243_v0  ;;  %v266_v10 = vadd.f32 %v265_v1, %v253_v57  ;;  %v273_v11 = vadd.f32 %v272_v2, %v254_v58 }
  0x3e   :  { %v378_v12 = vsel %vm199_vm14, 1.0, %v445_v24  ;;  %v379_v15 = vsel %vm200_vm15, 1.0, %v445_v24  ;;  %v259_v16 = vmul.f32 %v374_v59, %v174_v33  ;;  %v260_v17 = vmul.f32 %v375_v60, %v174_v33 }
  0x3f   :  { %v238_v19 = vadd.f32 %v376_v3, %v237_v7  ;;  %v245_v20 = vadd.f32 %v377_v4, %v244_v8  ;;  %v267_v21 = vadd.f32 %v266_v10, %v255_v61  ;;  %v274_v23 = vadd.f32 %v273_v11, %v256_v62 }
  0x40   :  { %v148_v25 = vadd.f32 %v147_v36, %v530_v13  ;;  %v155_v26 = vadd.f32 %v154_v30, %v532_v14  ;;  %v261_v29 = vmul.f32 %v376_v3, %v552_v34  ;;  %v262_v31 = vmul.f32 %v377_v4, %v552_v34 }
  0x41   :  { %v239_v37 = vadd.f32 %v378_v12, %v238_v19  ;;  %v246_v38 = vadd.f32 %v379_v15, %v245_v20  ;;  %v268_v39 = vadd.f32 %v267_v21, %v257_v5  ;;  %v275_v40 = vadd.f32 %v274_v23, %v258_v6 }
  0x42   :  { %v263_v41 = vmul.f32 %v378_v12, %v554_v35  ;;  %v264_v33 = vmul.f32 %v379_v15, %v554_v35  ;;  %v149_v14 = vadd.f32 %v148_v25, %v539_v22  ;;  %v156_v36 = vadd.f32 %v155_v26, %v544_v28 }
  0x43   :  { %v247_v42 = vadd.f32 %v239_v37, %v541_v27  ;;  %v248_v43 = vadd.f32 %v246_v38, %v550_v32  ;;  %v269_v44 = vadd.f32 %v268_v39, %v259_v16  ;;  %v276_v13 = vadd.f32 %v275_v40, %v260_v17 }
  0x45   :  { %v270_v30 = vadd.f32 %v269_v44, %v261_v29  ;;  %v277_v34 = vadd.f32 %v276_v13, %v262_v31  ;;  %v281_v45 = vmul.f32 %v247_v42, %v463_v9  ;;  %v282_v46 = vmul.f32 %v248_v43, %v471_v18 }
  0x47   :  { %v271_v47 = vadd.f32 %v270_v30, %v263_v41  ;;  %v278_v48 = vadd.f32 %v277_v34, %v264_v33  ;;  %v283_v49 = vadd.f32 1.0, %v281_v45  ;;  %v284_v35 = vadd.f32 1.0, %v282_v46 }
  0x49   :  { %v279_v50 = vadd.f32 %v271_v47, %v149_v14  ;;  %v280_v27 = vadd.f32 %v278_v48, %v156_v36 }
  0x4b   :  { %vm285_vm0 = vcmp.gt.f32.partialorder %v283_v49, %v279_v50  ;;  %vm286_vm1 = vcmp.gt.f32.partialorder %v284_v35, %v280_v27 }
  0x4c   :  { %v380_v32 = vsel %vm285_vm0, 1.0, %v445_v24  ;;  %v381_v22 = vsel %vm286_vm1, 1.0, %v445_v24 }
  0x4d   :  { %v291_v51 = vadd.f32 %v381_v22, %v380_v32  ;;  %v298_v28 = vmul.f32 %v380_v32, %v463_v9  ;;  %v299_v52 = vmul.f32 %v381_v22, %v471_v18 }
  0x4f   :  { %v292_v53 = vrot.slane %v291_v51, 4  ;;  %v300_v54 = vadd.f32 %v299_v52, %v298_v28 }
  0x51   :  { %v293_v55 = vadd.f32 %v292_v53, %v291_v51  ;;  %v301_v56 = vrot.slane %v300_v54, 4 }
  0x53   :  { %v294_v57 = vrot.slane %v293_v55, 2  ;;  %v302_v58 = vadd.f32 %v301_v56, %v300_v54 }
  0x55   :  { %v295_v59 = vadd.f32 %v294_v57, %v293_v55  ;;  %v303_v61 = vrot.slane %v302_v58, 2 }
  0x57   :  { %v296_v60 = vrot.slane %v295_v59, 1  ;;  %v304_v63 = vadd.f32 %v303_v61, %v302_v58 }
  0x59   :  { %v297_v62 = vadd.f32 %v296_v60, %v295_v59  ;;  %v305_v0 = vrot.slane %v304_v63, 1 }
  0x5b   :  { %388 = vrcp.f32 %v297_v62  ;;  %v306_v2 = vadd.f32 %v305_v0, %v304_v63  ;;  %v319_v3 = vand.u32 2147483648, %v297_v62  ;;  %vm313_vm2 = vweird.f32 %v297_v62 }
  0x5c   :  { %v317_v5 = vand.u32 2147483647, %v297_v62 }
  0x5d   :  { %v320_v7 = vor.u32 1.1754944e-38, %v319_v3  ;;  %v382_v8 = vadd.f32 -1.0, %v306_v2 }
  0x5e   :  { %vm318_vm5 = vcmp.eq.f32.partialorder %v317_v5, 8.507059e+37 }
  0x61   :  { %v389_v1 = vpop.eup %388 }
  0x62   :  { %v309_v24 = vmul.f32 %v389_v1, %v297_v62  ;;  %vm314_vm3 = vweird.f32 %v389_v1 }
  0x63   :  { %vm315_vm4 = vmor %vm313_vm2, %vm314_vm3 }
  0x64   :  { %v310_v4 = vsub.f32 1.0, %v309_v24 }
  0x66   :  { %v311_v6 = vmul.f32 %v389_v1, %v310_v4 }
  0x68   :  { %v312_v10 = vadd.f32 %v389_v1, %v311_v6 }
  0x6a   :  { %v316_v11 = vsel %vm315_vm4, %v389_v1, %v312_v10 }
  0x6b   :  { %v321_v12 = vsel %vm318_vm5, %v320_v7, %v316_v11 }
  0x6c   :  { %v322_v15 = vmul.f32 %v382_v8, %v321_v12 }
  0x6e   :  { %v323_v16 = vsub.f32 %v463_v9, %v322_v15  ;;  %v324_v17 = vsub.f32 %v471_v18, %v322_v15 }
  0x70   :  { %v325_v19 = vmax.f32 %v323_v16, 0.0  ;;  %v326_v20 = vmax.f32 %v324_v17, 0.0 }
  0x72   :  { %327 = vst [vmem:[#allocation6] sm:$0xff] %v325_v19 }
  0x73   :  { %328 = vst [vmem:[#allocation6 + $0x8] sm:$0xff] %v326_v20 }
  0x74   :  { %341 = dma.vmem_to_hbm [thread:$0]  %s334_s13, 256, %s336_s16, [#allocation5], %s443_s11, %s443_s11, %s444_s12  }
  0x75   :  { %440 = dma.done.wait [#allocation5], 256  }
  0x76   :  { %441 = vsyncadd [#allocation5], 4294967040 }
  0x77   :  { %346 = vsyncpa [#allocation4], 1 }
  0x78   :  { %347 = vsyncpa [#allocation5], 1 }

</bundles_post_ra>
